<compile_context>
chip_gen: v5e
topology: v5e:2x2
jax: 0.10.0
libtpu: 0.0.40
codegen_flags: <defaults>
</compile_context>

<pallas_src>
import math
import functools

import numpy as np
import jax
import jax.numpy as jnp
from jax.experimental import pallas as pl
from jax.experimental.pallas import tpu as pltpu


# ----------------------------------------------------------------------------
# PE table — exact formula from PositionalEncoder.__init__ (the module's
# non-textbook 2*(i+1)/d_model exponent on the cosine term is kept faithfully).
# ----------------------------------------------------------------------------
def build_pe_table(d_model, max_seq_len=16):
    pe = np.zeros((max_seq_len, d_model), dtype=np.float32)
    for pos in range(max_seq_len):
        for i in range(0, d_model, 2):
            pe[pos, i] = math.sin(pos / 10000 ** (2 * i / d_model))
            if i + 1 < d_model:  # original torch code assumes even d_model
                pe[pos, i + 1] = math.cos(pos / 10000 ** (2 * (i + 1) / d_model))
    return jnp.asarray(pe)


# ----------------------------------------------------------------------------
# Fused kernel:  out = x * sqrt(d_model) + pe      (pe broadcast over batch)
# Single fused multiply-add, one load per input, one store — v5e's single
# vector-store slot is the binding unit for copy-like elementwise, so no
# intermediate stores are introduced.
# ----------------------------------------------------------------------------
def _pe_kernel(x_ref, pe_ref, o_ref, *, scale):
    o_ref[...] = (x_ref[...] * scale + pe_ref[...]).astype(o_ref.dtype)


def positional_encode(x_bsd, pe_table):
    """x_bsd: (batch, seq, d_model); pe_table: (max_seq_len, d_model) f32."""
    B, S, D = x_bsd.shape
    max_seq_len = pe_table.shape[0]
    if S > max_seq_len:
        raise ValueError(f"seq_len {S} exceeds max_seq_len {max_seq_len}")

    scale = math.sqrt(D)
    pe_slice = pe_table[:S].astype(x_bsd.dtype)  # static slice + dtype match

    # Explicit lane-dense fast path: flatten (seq, d_model) onto the 128-lane
    # axis only when it stays a multiple of 128 (full unmasked vst).
    if (S * D) % 128 == 0:
        x_in = x_bsd.reshape(B, S * D)
        pe_in = pe_slice.reshape(1, S * D)
        out_shape = jax.ShapeDtypeStruct((B, S * D), x_bsd.dtype)
    else:
        # Fallback: keep the natural 3-D layout (may use masked stores if
        # d_model is not a multiple of 128, but stays correct).
        x_in = x_bsd
        pe_in = pe_slice[None]
        out_shape = jax.ShapeDtypeStruct((B, S, D), x_bsd.dtype)

    vmem = pl.BlockSpec(memory_space=pltpu.MemorySpace.VMEM)
    out = pl.pallas_call(
        functools.partial(_pe_kernel, scale=scale),
        out_shape=out_shape,
        in_specs=[vmem, vmem],          # whole (tiny) arrays resident in VMEM
        out_specs=vmem,
        input_output_aliases={0: 0},    # out reuses x's buffer (elementwise)
    )(x_in, pe_in)
    return out.reshape(B, S, D)


# ----------------------------------------------------------------------------
# Pure-JAX reference for correctness
# ----------------------------------------------------------------------------
def positional_encode_ref(x_bsd, pe_table):
    B, S, D = x_bsd.shape
    return x_bsd * math.sqrt(D) + pe_table[None, :S, :].astype(x_bsd.dtype)


if __name__ == "__main__":
    d_model, max_seq_len = 32, 16
    batch, seq = 2, 8

    key = jax.random.PRNGKey(0)
    x = jax.random.normal(key, (batch, seq, d_model), dtype=jnp.float32)
    pe = build_pe_table(d_model, max_seq_len)

    ref = jax.block_until_ready(positional_encode_ref(x, pe))
    out = jax.block_until_ready(positional_encode(x, pe))

    assert out.shape == (batch, seq, d_model)
    assert bool(jnp.max(jnp.abs(out - ref)) < 1e-5), "Pallas output mismatches reference"
    print("KERNEL_OK")
</pallas_src>

<mosaic_0001>
module attributes {stable_mosaic.version = 11 : i64} {
  func.func @_pe_kernel(%arg0: memref<2x256xf32, #tpu.memory_space<vmem>>, %arg1: memref<1x256xf32, #tpu.memory_space<vmem>>, %arg2: memref<2x256xf32, #tpu.memory_space<vmem>>) attributes {dimension_semantics = [], scalar_prefetch = 0 : i64, scratch_operands = 0 : i64, tpu.core_type = #tpu.core_type<tc>} {
    %c0 = arith.constant 0 : index
    %c0_0 = arith.constant 0 : index
    %0 = vector.load %arg0[%c0, %c0_0] : memref<2x256xf32, #tpu.memory_space<vmem>>, vector<2x256xf32>
    %cst = arith.constant 5.65685415 : f32
    %1 = vector.broadcast %cst : f32 to vector<2x256xf32>
    %2 = arith.mulf %0, %1 : vector<2x256xf32>
    %c0_1 = arith.constant 0 : index
    %c0_2 = arith.constant 0 : index
    %3 = vector.load %arg1[%c0_1, %c0_2] : memref<1x256xf32, #tpu.memory_space<vmem>>, vector<1x256xf32>
    %4 = vector.broadcast %3 : vector<1x256xf32> to vector<2x256xf32>
    %5 = arith.addf %2, %4 : vector<2x256xf32>
    %c0_3 = arith.constant 0 : index
    %c0_4 = arith.constant 0 : index
    %6 = vector.load %arg2[%c0_3, %c0_4] : memref<2x256xf32, #tpu.memory_space<vmem>>, vector<2x256xf32>
    tpu.vector_store %arg2[%c0_3, %c0_4], %5 {strides = array<i32>} : memref<2x256xf32, #tpu.memory_space<vmem>>, vector<2x256xf32>,
    return
  }
}

</mosaic_0001>

<bundles_post_ra>
// kernel: tpu_custom_call.1
= control target key start
LH: loop header
LB: loop body
LE: loop exit
PB: predicated region body
PF: predicated region fallthrough
CT: control target
= control target key end

     0   :  { %7 = vsyncpa [#allocation3], 0  ;;  %s135_s0 = inlined_call_operand.hbm [shape: f32[2,256], index: 0, kind: input, shape index: {}, may-alias: {0,2}]   ;;  %s136_s1 = inlined_call_operand.vmem [shape: f32[1,256], index: 1, kind: input, shape index: {}]   ;;  %s137_s2 = inlined_call_operand.hbm [shape: f32[2,256], index: 2, kind: output, shape index: {}, may-alias: {0,2}]  }
   0x1   :  { %8 = vsyncpa [#allocation4], 0  ;;  %s14_s11 = sshll.u32 %s135_s0, 4  ;;  %s109_s12 = smov [#allocation2]   ;;  %s15_s11 = int_to_ptr.hbm [resolvable:$true] %s14_s11 }
   0x2   :  { %s16_s13 = sshll.u32 %s109_s12, 4  ;;  %s17_s13 = int_to_ptr.vmem [resolvable:$true] %s16_s13 }
   0x3   :  { %19 = dma.hbm_to_vmem [thread:$0]  %s15_s11, 64, %s17_s13, [#allocation3]  }
   0x4   :  { %105 = dma.done.wait [#allocation3], 64  }
   0x5   :  { %106 = vsyncadd [#allocation3], 4294967232  ;;  %v26_v0 = vld [vmem:[#allocation2] sm:$0xf]  ;;  %vm33_vm0 = vcmask 1041408   ;;  %s110_s16 = smov [#allocation5]  }
   0x6   :  { %v28_v1 = vld [vmem:[%s136_s1] sm:$0x3]  ;;  %v27_v4 = vmul.f32 5.656854, %v26_v0  ;;  %s43_s17 = sshll.u32 %s110_s16, 4  ;;  %s45_s19 = sshll.u32 %s137_s2, 4  ;;  %s44_s17 = int_to_ptr.vmem [resolvable:$true] %s43_s17  ;;  %s46_s19 = int_to_ptr.hbm [resolvable:$true] %s45_s19 }
   0x7   :  { %v30_v2 = vperm.slane %v28_v1, 0  ;;  %v31_v3 = vperm.slane %v28_v1, 1 }
   0x9   :  { %v32_v5 = vrot.slane %v31_v3, 6 }
   0xb   :  { %v34_v6 = vsel %vm33_vm0, %v30_v2, %v32_v5 }
   0xc   :  { %v36_v7 = vadd.f32 %v34_v6, %v27_v4 }
   0xe   :  { %37 = vst [vmem:[#allocation5] sm:$0xf] %v36_v7 }
   0xf   :  { %48 = dma.vmem_to_hbm [thread:$0]  %s44_s17, 64, %s46_s19, [#allocation4]  }
  0x10   :  { %107 = dma.done.wait [#allocation4], 64  }
  0x11   :  { %108 = vsyncadd [#allocation4], 4294967232 }
  0x12   :  { %53 = vsyncpa [#allocation3], 1 }
  0x13   :  { %54 = vsyncpa [#allocation4], 1 }

</bundles_post_ra>
